<compile_context>
chip_gen: v6e
topology: v6e:2x2x1
jax: 0.10.0
libtpu: 0.0.40
codegen_flags: <defaults>
</compile_context>

<pallas_src>
import functools

import jax
import jax.numpy as jnp
from jax.experimental import pallas as pl
from jax.experimental.pallas import tpu as pltpu


# ----------------------------- config (small) -------------------------------
NUM_USERS = 64
NUM_ITEMS = 64
LATENT_DIM = 32
N_LAYERS = 2                              # lightGCN_n_layers
MLP_LAYERS = (2 * LATENT_DIM, 32, 16)     # config.layers (first = 2*latent_dim)
BATCH = 16

LANE = 128


def _round_up(x, m):
    return ((x + m - 1) // m) * m


# ----------------------------- fused kernel ---------------------------------
def _fused_kernel(u_ref, it_ref,            # (B, N) int32, lane-broadcast idx
                  graph_ref,                # (N, N) bf16 normalized adjacency
                  emb_ref,                  # (N, Dp) f32 padded embeddings
                  *rest,
                  n_layers, n, dp, batch, n_fc):
    n_params = 2 * n_fc + 2
    params = rest[:n_params]                # padded fc / affine weights+biases
    out_ref = rest[n_params]                # (B, 128) f32 lane-dense rating slab

    # ---- LightGCN propagation, fully VMEM-resident, statically unrolled ----
    g = graph_ref[...]                      # bf16 MXU operand
    e0 = emb_ref[...]                       # f32
    acc = e0                                # sum over layer outputs (f32)
    emb = e0.astype(jnp.bfloat16)
    for _ in range(n_layers):
        new = jnp.dot(g, emb, preferred_element_type=jnp.float32)   # (N, Dp)
        acc = acc + new
        emb = new.astype(jnp.bfloat16)

    # ---- one-hot MXU gather of user / item rows (exact: masks are 0/1) -----
    col = jax.lax.broadcasted_iota(jnp.int32, (batch, n), 1)
    sel_u = (col == u_ref[...]).astype(jnp.float32)     # (B, N)
    sel_i = (col == it_ref[...]).astype(jnp.float32)    # item idx pre-offset
    u_vec = jnp.dot(sel_u, acc, preferred_element_type=jnp.float32)  # (B, Dp)
    i_vec = jnp.dot(sel_i, acc, preferred_element_type=jnp.float32)  # (B, Dp)

    # ---- MLP rating head; 1/(n_layers+1) mean folded into first FC weight --
    w1 = params[0]                          # (2*Dp, H1p) ref, split to skip concat
    v = jnp.maximum(
        jnp.dot(u_vec, w1[pl.ds(0, dp), :], preferred_element_type=jnp.float32)
        + jnp.dot(i_vec, w1[pl.ds(dp, dp), :], preferred_element_type=jnp.float32)
        + params[1][...], 0.0)
    for k in range(1, n_fc):                # remaining fc + ReLU
        v = jnp.maximum(
            jnp.dot(v, params[2 * k][...], preferred_element_type=jnp.float32)
            + params[2 * k + 1][...], 0.0)
    logits = (jnp.dot(v, params[2 * n_fc][...], preferred_element_type=jnp.float32)
              + params[2 * n_fc + 1][...])
    out_ref[...] = jax.nn.sigmoid(logits)   # lane 0 = real rating


# ----------------------------- param padding --------------------------------
def _pad_mlp_params(fc, affine, d, dp, mean_scale):
    """Zero-pad MLP params to lane-dense (multiple-of-128) shapes, remap the
    first layer's input rows onto the padded [user | item] concat layout, and
    fold the 1/(n_layers+1) mean into the first FC weight."""
    padded = []
    w1, b1 = fc[0]
    h1 = w1.shape[1]
    h1p = _round_up(h1, LANE)
    w1p = jnp.zeros((2 * dp, h1p), jnp.float32)
    w1p = w1p.at[:d, :h1].set(mean_scale * w1[:d])            # user rows
    w1p = w1p.at[dp:dp + d, :h1].set(mean_scale * w1[d:])     # item rows
    b1p = jnp.zeros((1, h1p), jnp.float32).at[:, :h1].set(b1)
    padded += [w1p, b1p]
    prev = h1p
    for w, b in fc[1:]:
        i_sz, o_sz = w.shape
        op = _round_up(o_sz, LANE)
        wp = jnp.zeros((prev, op), jnp.float32).at[:i_sz, :o_sz].set(w)
        bp = jnp.zeros((1, op), jnp.float32).at[:, :o_sz].set(b)
        padded += [wp, bp]
        prev = op
    w_out, b_out = affine
    w_outp = jnp.zeros((prev, LANE), jnp.float32).at[:w_out.shape[0], :1].set(w_out)
    b_outp = jnp.zeros((1, LANE), jnp.float32).at[:, :1].set(b_out)
    padded += [w_outp, b_outp]
    return padded, len(fc)


# ----------------------------- wrapper ---------------------------------------
def lightgcn_forward(users, items, graph, params, *, n_layers=N_LAYERS):
    user_emb = params["embedding_user"].astype(jnp.float32)
    item_emb = params["embedding_item"].astype(jnp.float32)
    num_users, d = user_emb.shape
    num_items = item_emb.shape[0]
    n = num_users + num_items
    dp = _round_up(d, LANE)
    batch = users.shape[0]

    assert n_layers >= 1
    assert n % 8 == 0 and batch % 8 == 0

    all_emb = jnp.concatenate([user_emb, item_emb], axis=0)             # [N, D]
    all_emb_p = jnp.zeros((n, dp), jnp.float32).at[:, :d].set(all_emb)  # [N, Dp]
    # Adjacency is expected to be bf16 already (cast once at graph build time).
    graph_b = graph if graph.dtype == jnp.bfloat16 else graph.astype(jnp.bfloat16)

    padded_params, n_fc = _pad_mlp_params(
        params["fc"], params["affine_output"], d, dp,
        1.0 / float(n_layers + 1))

    # Lane-dense index inputs so the one-hot gather mask is a plain vector
    # compare inside the kernel (no SMEM scalar loop, no lane broadcast).
    u_full = jnp.broadcast_to(users.astype(jnp.int32)[:, None], (batch, n))
    it_full = jnp.broadcast_to(
        items.astype(jnp.int32)[:, None] + num_users, (batch, n))

    kernel = functools.partial(
        _fused_kernel, n_layers=n_layers, n=n, dp=dp, batch=batch, n_fc=n_fc)

    in_specs = [
        pl.BlockSpec((batch, n), lambda i: (0, 0)),     # user indices
        pl.BlockSpec((batch, n), lambda i: (0, 0)),     # item indices (+offset)
        pl.BlockSpec((n, n), lambda i: (0, 0)),         # adjacency (bf16)
        pl.BlockSpec((n, dp), lambda i: (0, 0)),        # embeddings (f32)
    ]
    for p in padded_params:
        in_specs.append(pl.BlockSpec(p.shape, lambda i: (0, 0)))

    out = pl.pallas_call(
        kernel,
        out_shape=jax.ShapeDtypeStruct((batch, LANE), jnp.float32),
        grid=(1,),
        in_specs=in_specs,
        out_specs=pl.BlockSpec((batch, LANE), lambda i: (0, 0)),
        compiler_params=pltpu.CompilerParams(
            dimension_semantics=("arbitrary",),
            vmem_limit_bytes=32 * 1024 * 1024,
        ),
    )(u_full, it_full, graph_b, all_emb_p, *padded_params)

    return out[:, :1]                                   # [B, 1] rating


# ----------------------------- pure-JAX reference ----------------------------
def reference_forward(users, items, graph, params, *, n_layers=N_LAYERS):
    """Mirrors kernel numerics (bf16 propagation operands, f32 accumulation)."""
    all_emb = jnp.concatenate(
        [params["embedding_user"], params["embedding_item"]], axis=0)
    g = graph.astype(jnp.bfloat16).astype(jnp.float32)
    acc = all_emb
    emb = all_emb.astype(jnp.bfloat16).astype(jnp.float32)
    for _ in range(n_layers):
        new = g @ emb
        acc = acc + new
        emb = new.astype(jnp.bfloat16).astype(jnp.float32)
    light = acc * (1.0 / float(n_layers + 1))
    num_users = params["embedding_user"].shape[0]
    u = light[:num_users][users]
    it = light[num_users:][items]
    v = jnp.concatenate([u, it], axis=-1)
    for w, b in params["fc"]:
        v = jnp.maximum(v @ w + b, 0.0)
    w_out, b_out = params["affine_output"]
    return jax.nn.sigmoid(v @ w_out + b_out)


# ----------------------------- param init -----------------------------------
def init_params(key):
    keys = jax.random.split(key, 16)
    ki = iter(keys)

    params = {}
    params["embedding_user"] = 0.1 * jax.random.normal(
        next(ki), (NUM_USERS, LATENT_DIM), dtype=jnp.float32)
    params["embedding_item"] = 0.1 * jax.random.normal(
        next(ki), (NUM_ITEMS, LATENT_DIM), dtype=jnp.float32)

    fc = []
    for in_size, out_size in zip(MLP_LAYERS[:-1], MLP_LAYERS[1:]):
        bound = 1.0 / jnp.sqrt(float(in_size))
        w = jax.random.uniform(next(ki), (in_size, out_size), jnp.float32,
                               -bound, bound)
        b = jax.random.uniform(next(ki), (1, out_size), jnp.float32,
                               -bound, bound)
        fc.append((w, b))
    params["fc"] = fc

    last = MLP_LAYERS[-1]
    bound = 1.0 / jnp.sqrt(float(last))
    w_out = jax.random.uniform(next(ki), (last, 1), jnp.float32, -bound, bound)
    b_out = jax.random.uniform(next(ki), (1, 1), jnp.float32, -bound, bound)
    params["affine_output"] = (w_out, b_out)
    return params


def make_graph(key):
    # Dense, symmetrically normalized (D^-1/2 A D^-1/2) stand-in for the
    # sparse adjacency passed to torch.sparse.mm.
    n = NUM_USERS + NUM_ITEMS
    a = jax.random.uniform(key, (n, n), jnp.float32)
    a = jnp.where(a > 0.9, a, 0.0)                 # sparse-ish
    a = a + jnp.eye(n, dtype=jnp.float32)          # self loops
    deg = jnp.sum(a, axis=1)
    d_inv_sqrt = 1.0 / jnp.sqrt(deg)
    g = a * d_inv_sqrt[:, None] * d_inv_sqrt[None, :]
    # Cast to bf16 once at build time (no per-forward-call HBM round trip).
    return g.astype(jnp.bfloat16)


if __name__ == "__main__":
    key = jax.random.PRNGKey(0)
    k_params, k_graph, k_u, k_i = jax.random.split(key, 4)

    params = init_params(k_params)
    graph = make_graph(k_graph)
    users = jax.random.randint(k_u, (BATCH,), 0, NUM_USERS, dtype=jnp.int32)
    items = jax.random.randint(k_i, (BATCH,), 0, NUM_ITEMS, dtype=jnp.int32)

    rating = jax.block_until_ready(lightgcn_forward(users, items, graph, params))
    ref = jax.block_until_ready(reference_forward(users, items, graph, params))

    assert rating.shape == (BATCH, 1)
    assert bool(jnp.all((rating >= 0.0) & (rating <= 1.0)))
    assert bool(jnp.allclose(rating, ref, atol=2e-3, rtol=2e-3)), (
        float(jnp.max(jnp.abs(rating - ref))))
    print("KERNEL_OK")
</pallas_src>

<mosaic_0001>
module attributes {stable_mosaic.version = 11 : i64} {
  func.func @_fused_kernel(%arg0: i32, %arg1: memref<16x128xi32, #tpu.memory_space<vmem>>, %arg2: memref<16x128xi32, #tpu.memory_space<vmem>>, %arg3: memref<128x128xbf16, #tpu.memory_space<vmem>>, %arg4: memref<128x128xf32, #tpu.memory_space<vmem>>, %arg5: memref<256x128xf32, #tpu.memory_space<vmem>>, %arg6: memref<1x128xf32, #tpu.memory_space<vmem>>, %arg7: memref<128x128xf32, #tpu.memory_space<vmem>>, %arg8: memref<1x128xf32, #tpu.memory_space<vmem>>, %arg9: memref<128x128xf32, #tpu.memory_space<vmem>>, %arg10: memref<1x128xf32, #tpu.memory_space<vmem>>, %arg11: memref<16x128xf32, #tpu.memory_space<vmem>>) attributes {dimension_semantics = [#tpu.dimension_semantics<arbitrary>], iteration_bounds = array<i64: 1>, scalar_prefetch = 0 : i64, scratch_operands = 0 : i64, tpu.core_type = #tpu.core_type<tc>, window_params = [{pipeline_mode = #tpu.pipeline_mode<synchronous>, transform_indices = @transform_0, window_bounds = array<i64: 16, 128>}, {pipeline_mode = #tpu.pipeline_mode<synchronous>, transform_indices = @transform_1, window_bounds = array<i64: 16, 128>}, {pipeline_mode = #tpu.pipeline_mode<synchronous>, transform_indices = @transform_2, window_bounds = array<i64: 128, 128>}, {pipeline_mode = #tpu.pipeline_mode<synchronous>, transform_indices = @transform_3, window_bounds = array<i64: 128, 128>}, {pipeline_mode = #tpu.pipeline_mode<synchronous>, transform_indices = @transform_4, window_bounds = array<i64: 256, 128>}, {pipeline_mode = #tpu.pipeline_mode<synchronous>, transform_indices = @transform_5, window_bounds = array<i64: 1, 128>}, {pipeline_mode = #tpu.pipeline_mode<synchronous>, transform_indices = @transform_6, window_bounds = array<i64: 128, 128>}, {pipeline_mode = #tpu.pipeline_mode<synchronous>, transform_indices = @transform_7, window_bounds = array<i64: 1, 128>}, {pipeline_mode = #tpu.pipeline_mode<synchronous>, transform_indices = @transform_8, window_bounds = array<i64: 128, 128>}, {pipeline_mode = #tpu.pipeline_mode<synchronous>, transform_indices = @transform_9, window_bounds = array<i64: 1, 128>}, {pipeline_mode = #tpu.pipeline_mode<synchronous>, transform_indices = @transform_10, window_bounds = array<i64: 16, 128>}]} {
    %c0 = arith.constant 0 : index
    %c0_0 = arith.constant 0 : index
    %0 = vector.load %arg3[%c0, %c0_0] : memref<128x128xbf16, #tpu.memory_space<vmem>>, vector<128x128xbf16>
    %c0_1 = arith.constant 0 : index
    %c0_2 = arith.constant 0 : index
    %1 = vector.load %arg4[%c0_1, %c0_2] : memref<128x128xf32, #tpu.memory_space<vmem>>, vector<128x128xf32>
    %2 = arith.truncf %1 : vector<128x128xf32> to vector<128x128xbf16>
    %cst = arith.constant dense<0.000000e+00> : vector<128x128xf32>
    %3 = tpu.matmul %0, %2, %cst {dimension_numbers = #tpu.dot_dimension_numbers<[1], [0], [0], [1], [0, 0, 1, 1], [], []>} : vector<128x128xbf16>, vector<128x128xbf16>, vector<128x128xf32> -> vector<128x128xf32>
    %4 = arith.addf %1, %3 : vector<128x128xf32>
    %5 = arith.truncf %3 : vector<128x128xf32> to vector<128x128xbf16>
    %cst_3 = arith.constant dense<0.000000e+00> : vector<128x128xf32>
    %6 = tpu.matmul %0, %5, %cst_3 {dimension_numbers = #tpu.dot_dimension_numbers<[1], [0], [0], [1], [0, 0, 1, 1], [], []>} : vector<128x128xbf16>, vector<128x128xbf16>, vector<128x128xf32> -> vector<128x128xf32>
    %7 = arith.addf %4, %6 : vector<128x128xf32>
    %8 = tpu.iota {dimensions = array<i32: 1>} : vector<16x128xi32>
    %c0_4 = arith.constant 0 : index
    %c0_5 = arith.constant 0 : index
    %9 = vector.load %arg1[%c0_4, %c0_5] : memref<16x128xi32, #tpu.memory_space<vmem>>, vector<16x128xi32>
    %10 = arith.cmpi eq, %8, %9 : vector<16x128xi32>
    %11 = arith.extui %10 : vector<16x128xi1> to vector<16x128xi32>
    %12 = arith.sitofp %11 : vector<16x128xi32> to vector<16x128xf32>
    %c0_6 = arith.constant 0 : index
    %c0_7 = arith.constant 0 : index
    %13 = vector.load %arg2[%c0_6, %c0_7] : memref<16x128xi32, #tpu.memory_space<vmem>>, vector<16x128xi32>
    %14 = arith.cmpi eq, %8, %13 : vector<16x128xi32>
    %15 = arith.extui %14 : vector<16x128xi1> to vector<16x128xi32>
    %16 = arith.sitofp %15 : vector<16x128xi32> to vector<16x128xf32>
    %cst_8 = arith.constant dense<0.000000e+00> : vector<16x128xf32>
    %17 = tpu.matmul %12, %7, %cst_8 {dimension_numbers = #tpu.dot_dimension_numbers<[1], [0], [0], [1], [0, 0, 1, 1], [], []>} : vector<16x128xf32>, vector<128x128xf32>, vector<16x128xf32> -> vector<16x128xf32>
    %cst_9 = arith.constant dense<0.000000e+00> : vector<16x128xf32>
    %18 = tpu.matmul %16, %7, %cst_9 {dimension_numbers = #tpu.dot_dimension_numbers<[1], [0], [0], [1], [0, 0, 1, 1], [], []>} : vector<16x128xf32>, vector<128x128xf32>, vector<16x128xf32> -> vector<16x128xf32>
    %c0_10 = arith.constant 0 : index
    %c0_11 = arith.constant 0 : index
    %19 = vector.load %arg5[%c0_10, %c0_11] : memref<256x128xf32, #tpu.memory_space<vmem>>, vector<128x128xf32>
    %cst_12 = arith.constant dense<0.000000e+00> : vector<16x128xf32>
    %20 = tpu.matmul %17, %19, %cst_12 {dimension_numbers = #tpu.dot_dimension_numbers<[1], [0], [0], [1], [0, 0, 1, 1], [], []>} : vector<16x128xf32>, vector<128x128xf32>, vector<16x128xf32> -> vector<16x128xf32>
    %c128 = arith.constant 128 : index
    %c0_13 = arith.constant 0 : index
    %21 = vector.load %arg5[%c128, %c0_13] : memref<256x128xf32, #tpu.memory_space<vmem>>, vector<128x128xf32>
    %cst_14 = arith.constant dense<0.000000e+00> : vector<16x128xf32>
    %22 = tpu.matmul %18, %21, %cst_14 {dimension_numbers = #tpu.dot_dimension_numbers<[1], [0], [0], [1], [0, 0, 1, 1], [], []>} : vector<16x128xf32>, vector<128x128xf32>, vector<16x128xf32> -> vector<16x128xf32>
    %23 = arith.addf %20, %22 : vector<16x128xf32>
    %c0_15 = arith.constant 0 : index
    %c0_16 = arith.constant 0 : index
    %24 = vector.load %arg6[%c0_15, %c0_16] : memref<1x128xf32, #tpu.memory_space<vmem>>, vector<1x128xf32>
    %25 = vector.broadcast %24 : vector<1x128xf32> to vector<16x128xf32>
    %26 = arith.addf %23, %25 : vector<16x128xf32>
    %cst_17 = arith.constant 0.000000e+00 : f32
    %27 = vector.broadcast %cst_17 : f32 to vector<16x128xf32>
    %28 = arith.maximumf %26, %27 : vector<16x128xf32>
    %c0_18 = arith.constant 0 : index
    %c0_19 = arith.constant 0 : index
    %29 = vector.load %arg7[%c0_18, %c0_19] : memref<128x128xf32, #tpu.memory_space<vmem>>, vector<128x128xf32>
    %cst_20 = arith.constant dense<0.000000e+00> : vector<16x128xf32>
    %30 = tpu.matmul %28, %29, %cst_20 {dimension_numbers = #tpu.dot_dimension_numbers<[1], [0], [0], [1], [0, 0, 1, 1], [], []>} : vector<16x128xf32>, vector<128x128xf32>, vector<16x128xf32> -> vector<16x128xf32>
    %c0_21 = arith.constant 0 : index
    %c0_22 = arith.constant 0 : index
    %31 = vector.load %arg8[%c0_21, %c0_22] : memref<1x128xf32, #tpu.memory_space<vmem>>, vector<1x128xf32>
    %32 = vector.broadcast %31 : vector<1x128xf32> to vector<16x128xf32>
    %33 = arith.addf %30, %32 : vector<16x128xf32>
    %cst_23 = arith.constant 0.000000e+00 : f32
    %34 = vector.broadcast %cst_23 : f32 to vector<16x128xf32>
    %35 = arith.maximumf %33, %34 : vector<16x128xf32>
    %c0_24 = arith.constant 0 : index
    %c0_25 = arith.constant 0 : index
    %36 = vector.load %arg9[%c0_24, %c0_25] : memref<128x128xf32, #tpu.memory_space<vmem>>, vector<128x128xf32>
    %cst_26 = arith.constant dense<0.000000e+00> : vector<16x128xf32>
    %37 = tpu.matmul %35, %36, %cst_26 {dimension_numbers = #tpu.dot_dimension_numbers<[1], [0], [0], [1], [0, 0, 1, 1], [], []>} : vector<16x128xf32>, vector<128x128xf32>, vector<16x128xf32> -> vector<16x128xf32>
    %c0_27 = arith.constant 0 : index
    %c0_28 = arith.constant 0 : index
    %38 = vector.load %arg10[%c0_27, %c0_28] : memref<1x128xf32, #tpu.memory_space<vmem>>, vector<1x128xf32>
    %39 = vector.broadcast %38 : vector<1x128xf32> to vector<16x128xf32>
    %40 = arith.addf %37, %39 : vector<16x128xf32>
    %41 = arith.negf %40 : vector<16x128xf32>
    %42 = math.exp %41 : vector<16x128xf32>
    %cst_29 = arith.constant 1.000000e+00 : f32
    %43 = vector.broadcast %cst_29 : f32 to vector<16x128xf32>
    %44 = arith.addf %43, %42 : vector<16x128xf32>
    %45 = arith.divf %43, %44 : vector<16x128xf32>
    %c0_30 = arith.constant 0 : index
    %c0_31 = arith.constant 0 : index
    %46 = vector.load %arg11[%c0_30, %c0_31] : memref<16x128xf32, #tpu.memory_space<vmem>>, vector<16x128xf32>
    tpu.vector_store %arg11[%c0_30, %c0_31], %45 {strides = array<i32>} : memref<16x128xf32, #tpu.memory_space<vmem>>, vector<16x128xf32>,
    return
  }
  func.func @transform_0(%arg0: i32) -> (i32, i32) {
    %c0_i32 = arith.constant 0 : i32
    %c0_i32_0 = arith.constant 0 : i32
    %c0_i32_1 = arith.constant 0 : i32
    return %c0_i32, %c0_i32_0 : i32, i32
  }
  func.func @transform_1(%arg0: i32) -> (i32, i32) {
    %c0_i32 = arith.constant 0 : i32
    %c0_i32_0 = arith.constant 0 : i32
    %c0_i32_1 = arith.constant 0 : i32
    return %c0_i32, %c0_i32_0 : i32, i32
  }
  func.func @transform_2(%arg0: i32) -> (i32, i32) {
    %c0_i32 = arith.constant 0 : i32
    %c0_i32_0 = arith.constant 0 : i32
    %c0_i32_1 = arith.constant 0 : i32
    return %c0_i32, %c0_i32_0 : i32, i32
  }
  func.func @transform_3(%arg0: i32) -> (i32, i32) {
    %c0_i32 = arith.constant 0 : i32
    %c0_i32_0 = arith.constant 0 : i32
    %c0_i32_1 = arith.constant 0 : i32
    return %c0_i32, %c0_i32_0 : i32, i32
  }
  func.func @transform_4(%arg0: i32) -> (i32, i32) {
    %c0_i32 = arith.constant 0 : i32
    %c0_i32_0 = arith.constant 0 : i32
    %c0_i32_1 = arith.constant 0 : i32
    return %c0_i32, %c0_i32_0 : i32, i32
  }
  func.func @transform_5(%arg0: i32) -> (i32, i32) {
    %c0_i32 = arith.constant 0 : i32
    %c0_i32_0 = arith.constant 0 : i32
    %c0_i32_1 = arith.constant 0 : i32
    return %c0_i32, %c0_i32_0 : i32, i32
  }
  func.func @transform_6(%arg0: i32) -> (i32, i32) {
    %c0_i32 = arith.constant 0 : i32
    %c0_i32_0 = arith.constant 0 : i32
    %c0_i32_1 = arith.constant 0 : i32
    return %c0_i32, %c0_i32_0 : i32, i32
  }
  func.func @transform_7(%arg0: i32) -> (i32, i32) {
    %c0_i32 = arith.constant 0 : i32
    %c0_i32_0 = arith.constant 0 : i32
    %c0_i32_1 = arith.constant 0 : i32
    return %c0_i32, %c0_i32_0 : i32, i32
  }
  func.func @transform_8(%arg0: i32) -> (i32, i32) {
    %c0_i32 = arith.constant 0 : i32
    %c0_i32_0 = arith.constant 0 : i32
    %c0_i32_1 = arith.constant 0 : i32
    return %c0_i32, %c0_i32_0 : i32, i32
  }
  func.func @transform_9(%arg0: i32) -> (i32, i32) {
    %c0_i32 = arith.constant 0 : i32
    %c0_i32_0 = arith.constant 0 : i32
    %c0_i32_1 = arith.constant 0 : i32
    return %c0_i32, %c0_i32_0 : i32, i32
  }
  func.func @transform_10(%arg0: i32) -> (i32, i32) {
    %c0_i32 = arith.constant 0 : i32
    %c0_i32_0 = arith.constant 0 : i32
    %c0_i32_1 = arith.constant 0 : i32
    return %c0_i32, %c0_i32_0 : i32, i32
  }
}

</mosaic_0001>

<bundles_post_ra>
// kernel: tpu_custom_call.1
= control target key start
LH: loop header
LB: loop body
LE: loop exit
PB: predicated region body
PF: predicated region fallthrough
CT: control target
= control target key end

     0   :  { %15 = vsyncpa [#allocation3], 0  ;;  %s1950_s0 = inlined_call_operand.hbm [shape: s32[16,128], index: 0, kind: input, shape index: {}]   ;;  %s1951_s1 = inlined_call_operand.hbm [shape: s32[16,128], index: 1, kind: input, shape index: {}]   ;;  %s1952_s2 = inlined_call_operand.hbm [shape: bf16[128,128], index: 2, kind: input, shape index: {}]   ;;  %s1953_s3 = inlined_call_operand.hbm [shape: f32[128,128], index: 3, kind: input, shape index: {}]   ;;  %s1954_s4 = inlined_call_operand.hbm [shape: f32[256,128], index: 4, kind: input, shape index: {}]   ;;  %s1955_s5 = inlined_call_operand.vmem [shape: f32[1,128], index: 5, kind: input, shape index: {}]   ;;  %s1956_s6 = inlined_call_operand.hbm [shape: f32[128,128], index: 6, kind: input, shape index: {}]   ;;  %s1957_s7 = inlined_call_operand.vmem [shape: f32[1,128], index: 7, kind: input, shape index: {}]   ;;  %s1958_s8 = inlined_call_operand.hbm [shape: f32[128,128], index: 8, kind: input, shape index: {}]   ;;  %s1959_s9 = inlined_call_operand.vmem [shape: f32[1,128], index: 9, kind: input, shape index: {}]   ;;  %s1960_s10 = inlined_call_operand.hbm [shape: f32[16,128], index: 10, kind: output, shape index: {}]  }
   0x1   :  { %16 = vsyncpa [#allocation6], 0 }
   0x2   :  { %17 = vsyncpa [#allocation9], 0 }
   0x3   :  { %18 = vsyncpa [#allocation12], 0 }
   0x4   :  { %19 = vsyncpa [#allocation4], 0  ;;  %s1681_s13 = smov [#allocation5]   ;;  %s1682_s15 = smov [#allocation8]  }
   0x5   :  { %s37_s14 = sshll.u32 %s1681_s13, 4  ;;  %s61_s16 = sshll.u32 %s1682_s15, 4  ;;  %s38_s14 = int_to_ptr.vmem [resolvable:$true] %s37_s14  ;;  %s62_s16 = int_to_ptr.vmem [resolvable:$true] %s61_s16 }
   0x6   :  { %s1519_s17 = scalar_lea.vmem %s38_s14, 256  ;;  %p1524_p1 = scmp.lt.s32.totalorder %s38_s14, %s38_s14 }
   0x7   :  { %p1520_p0 = scmp.ne.s32.totalorder %s38_s14, %s1519_s17  ;;  %p1525_p2 = scmp.lt.s32.totalorder %s1519_s17, %s1519_s17 }
   0x9   :  { %p1526_p3 = por %p1525_p2, %p1524_p1 }
   0xb   :  { %p1527_p4 = pnand %p1526_p3, %p1520_p0 }
   0xd   :  { %1530 = shalt.err (!%p1527_p4)
}
   0xe   :  { %s1683_s18 = smov 128   ;;  %s1684_s19 = smov 8  }
   0xf   :  { %43 = dma.hbm_to_vmem [thread:$0]  %s1951_s1, 256, %s38_s14, [#allocation6], %s1683_s18, %s1683_s18, %s1684_s19  }
  0x10   :  { %s1539_s22 = scalar_lea.vmem %s62_s16, 2048  ;;  %p1544_p6 = scmp.lt.s32.totalorder %s62_s16, %s62_s16 }
  0x11   :  { %p1540_p5 = scmp.ne.s32.totalorder %s62_s16, %s1539_s22  ;;  %p1545_p7 = scmp.lt.s32.totalorder %s1539_s22, %s1539_s22 }
  0x13   :  { %p1546_p8 = por %p1545_p7, %p1544_p6 }
  0x15   :  { %p1547_p9 = pnand %p1546_p8, %p1540_p5 }
  0x17   :  { %1550 = shalt.err (!%p1547_p9)
}
  0x18   :  { %67 = dma.hbm_to_vmem [thread:$0]  %s1953_s3, 2048, %s62_s16, [#allocation9], %s1683_s18, %s1683_s18, %s1684_s19  }
  0x19   :  { %s1685_s25 = smov [#allocation11]   ;;  %s1686_s27 = smov [#allocation2]  }
  0x1a   :  { %s87_s26 = sshll.u32 %s1685_s25, 4  ;;  %s25_s28 = sshll.u32 %s1686_s27, 4  ;;  %s88_s26 = int_to_ptr.vmem [resolvable:$true] %s87_s26  ;;  %s26_s28 = int_to_ptr.vmem [resolvable:$true] %s25_s28 }
  0x1b   :  { %s1559_s1 = scalar_lea.vmem %s88_s26, 2048  ;;  %p1564_p11 = scmp.lt.s32.totalorder %s88_s26, %s88_s26 }
  0x1c   :  { %p1560_p10 = scmp.ne.s32.totalorder %s88_s26, %s1559_s1  ;;  %p1565_p12 = scmp.lt.s32.totalorder %s1559_s1, %s1559_s1 }
  0x1e   :  { %p1566_p13 = por %p1565_p12, %p1564_p11 }
  0x20   :  { %p1567_p0 = pnand %p1566_p13, %p1560_p10 }
  0x22   :  { %1570 = shalt.err (!%p1567_p0)
}
  0x23   :  { %93 = dma.hbm_to_vmem [thread:$0]  %s1956_s6, 2048, %s88_s26, [#allocation12], %s1683_s18, %s1683_s18, %s1684_s19  }
  0x24   :  { %s1579_s3 = scalar_lea.vmem %s26_s28, 256  ;;  %p1584_p2 = scmp.lt.s32.totalorder %s26_s28, %s26_s28 }
  0x25   :  { %p1580_p1 = scmp.ne.s32.totalorder %s26_s28, %s1579_s3  ;;  %p1585_p3 = scmp.lt.s32.totalorder %s1579_s3, %s1579_s3 }
  0x27   :  { %p1586_p4 = por %p1585_p3, %p1584_p2 }
  0x29   :  { %p1587_p5 = pnand %p1586_p4, %p1580_p1 }
  0x2b   :  { %1590 = shalt.err (!%p1587_p5)
}
  0x2c   :  { %31 = dma.hbm_to_vmem [thread:$0]  %s1950_s0, 256, %s26_s28, [#allocation3], %s1683_s18, %s1683_s18, %s1684_s19  }
  0x2d   :  { %s1687_s13 = smov [#allocation7]  }
  0x2e   :  { %s49_s14 = sshll.u32 %s1687_s13, 4  ;;  %s50_s14 = int_to_ptr.vmem [resolvable:$true] %s49_s14 }
  0x2f   :  { %s1599_s15 = scalar_lea.vmem %s50_s14, 1024  ;;  %p1604_p7 = scmp.lt.s32.totalorder %s50_s14, %s50_s14 }
  0x30   :  { %p1600_p6 = scmp.ne.s32.totalorder %s50_s14, %s1599_s15  ;;  %p1605_p8 = scmp.lt.s32.totalorder %s1599_s15, %s1599_s15 }
  0x32   :  { %p1606_p9 = por %p1605_p8, %p1604_p7 }
  0x34   :  { %p1607_p10 = pnand %p1606_p9, %p1600_p6 }
  0x36   :  { %1610 = shalt.err (!%p1607_p10)
}
  0x37   :  { %s1688_s6 = smov 64   ;;  %s1689_s16 = smov 4  }
  0x38   :  { %55 = dma.hbm_to_vmem [thread:$0]  %s1952_s2, 1024, %s50_s14, [#allocation6], %s1688_s6, %s1688_s6, %s1689_s16  }
  0x39   :  { %s1690_s21 = smov [#allocation10]   ;;  %s1691_s0 = smov [#allocation13]  }
  0x3a   :  { %s73_s22 = sshll.u32 %s1690_s21, 4  ;;  %s101_s23 = sshll.u32 %s1691_s0, 4  ;;  %s74_s22 = int_to_ptr.vmem [resolvable:$true] %s73_s22  ;;  %s102_s23 = int_to_ptr.vmem [resolvable:$true] %s101_s23 }
  0x3b   :  { %s1619_s24 = scalar_lea.vmem %s74_s22, 4096  ;;  %p1624_p12 = scmp.lt.s32.totalorder %s74_s22, %s74_s22 }
  0x3c   :  { %p1620_p11 = scmp.ne.s32.totalorder %s74_s22, %s1619_s24  ;;  %p1625_p13 = scmp.lt.s32.totalorder %s1619_s24, %s1619_s24 }
  0x3e   :  { %p1626_p0 = por %p1625_p13, %p1624_p12 }
  0x40   :  { %p1627_p1 = pnand %p1626_p0, %p1620_p11 }
  0x42   :  { %1630 = shalt.err (!%p1627_p1)
}
  0x43   :  { %79 = dma.hbm_to_vmem [thread:$0]  %s1954_s4, 4096, %s74_s22, [#allocation9], %s1683_s18, %s1683_s18, %s1684_s19  }
  0x44   :  { %s1639_s2 = scalar_lea.vmem %s102_s23, 2048  ;;  %p1644_p3 = scmp.lt.s32.totalorder %s102_s23, %s102_s23 }
  0x45   :  { %p1640_p2 = scmp.ne.s32.totalorder %s102_s23, %s1639_s2  ;;  %p1645_p4 = scmp.lt.s32.totalorder %s1639_s2, %s1639_s2 }
  0x47   :  { %p1646_p5 = por %p1645_p4, %p1644_p3 }
  0x49   :  { %p1647_p6 = pnand %p1646_p5, %p1640_p2 }
  0x4b   :  { %1650 = shalt.err (!%p1647_p6)
}
  0x4c   :  { %107 = dma.hbm_to_vmem [thread:$0]  %s1958_s8, 2048, %s102_s23, [#allocation12], %s1683_s18, %s1683_s18, %s1684_s19  }
  0x4d   :  { %1671 = dma.done.wait [#allocation3], 256  }
  0x4e   :  { %1672 = vsyncadd [#allocation3], 4294967040 }
  0x4f   :  { %1673 = dma.done.wait [#allocation6], 1280  }
  0x50   :  { %1674 = vsyncadd [#allocation6], 4294966016 }
  0x51   :  { %1675 = dma.done.wait [#allocation9], 6144  }
  0x52   :  { %1676 = vsyncadd [#allocation9], 4294961152 }
  0x53   :  { %1677 = dma.done.wait [#allocation12], 4096  }
  0x54   :  { %1678 = vsyncadd [#allocation12], 4294963200  ;;  %v1788_v0 = vld [vmem:[#allocation8 + $0x70] sm:$0xff]  ;;  %v1790_v1 = vld [vmem:[#allocation8 + $0x78] sm:$0xff]  ;;  %v454_v56 = vlaneseq  ;;  %v1692_v60 = vmov 1.0  }
  0x55   :  { %v1792_v2 = vld [vmem:[#allocation8 + $0x60] sm:$0xff]  ;;  %v171_v3 = vpack.c.bf16 %v1790_v1, %v1788_v0  ;;  %v1796_v4 = vld [vmem:[#allocation8 + $0x68] sm:$0xff]  ;;  %v1800_v6 = vld [vmem:[#allocation8 + $0x50] sm:$0xff] }
  0x56   :  { %v170_v5 = vpack.c.bf16 %v1796_v4, %v1792_v2  ;;  %v1802_v7 = vld [vmem:[#allocation8 + $0x58] sm:$0xff]  ;;  %v1804_v8 = vld [vmem:[#allocation8 + $0x40] sm:$0xff]  ;;  %v1808_v10 = vld [vmem:[#allocation8 + $0x48] sm:$0xff]  ;;  %v1875_v57 = vand.u32 127, %v454_v56 }
  0x57   :  { %1208 = vmatprep.subr.bf16.mxu0 %v171_v3  ;;  %v169_v9 = vpack.c.bf16 %v1802_v7, %v1800_v6  ;;  %v1495_v11 = vld [vmem:[#allocation7] sm:$0xff]   ;;  %v168_v12 = vpack.c.bf16 %v1808_v10, %v1804_v8  ;;  %v1812_v13 = vld [vmem:[#allocation8 + $0x30] sm:$0xff]  ;;  %v1814_v14 = vld [vmem:[#allocation8 + $0x38] sm:$0xff] }
  0x58   :  { %1209 = vmatpush3.bf16.msra.mxu0 %v171_v3  ;;  %1224 = vmatprep.mubr.bf16.mxu0 %v1495_v11  ;;  %v167_v15 = vpack.c.bf16 %v1814_v14, %v1812_v13  ;;  %v1818_v16 = vld [vmem:[#allocation8 + $0x20] sm:$0xff]  ;;  %v1820_v17 = vld [vmem:[#allocation8 + $0x28] sm:$0xff]  ;;  %v1824_v19 = vld [vmem:[#allocation8 + $0x10] sm:$0xff] }
  0x59   :  { %1210 = vmatprep.subr.bf16.mxu0 %v170_v5  ;;  %1256 = vmatprep.mubr.bf16.mxu1 %v1495_v11  ;;  %v166_v18 = vpack.c.bf16 %v1820_v17, %v1818_v16  ;;  %v1826_v20 = vld [vmem:[#allocation8 + $0x18] sm:$0xff]  ;;  %v1830_v22 = vld [vmem:[#allocation8] sm:$0xff]  ;;  %v1832_v23 = vld [vmem:[#allocation8 + $0x8] sm:$0xff] }
  0x5a   :  { %v165_v21 = vpack.c.bf16 %v1826_v20, %v1824_v19  ;;  %v164_v24 = vpack.c.bf16 %v1832_v23, %v1830_v22  ;;  %v1496_v25 = vld [vmem:[#allocation7 + $0x8] sm:$0xff]   ;;  %v1497_v26 = vld [vmem:[#allocation7 + $0x10] sm:$0xff]   ;;  %v1498_v27 = vld [vmem:[#allocation7 + $0x18] sm:$0xff]  }
  0x5b   :  { %v1499_v28 = vld [vmem:[#allocation7 + $0x20] sm:$0xff]   ;;  %v1500_v29 = vld [vmem:[#allocation7 + $0x28] sm:$0xff]   ;;  %v1501_v30 = vld [vmem:[#allocation7 + $0x30] sm:$0xff]  }
  0x5c   :  { %1211 = vmatpush3.bf16.msra.mxu0 %v170_v5  ;;  %v1502_v31 = vld [vmem:[#allocation7 + $0x38] sm:$0xff]   ;;  %v456_v58 = vld [vmem:[#allocation2] sm:$0xff]  ;;  %v464_v59 = vld [vmem:[#allocation5] sm:$0xff] }
  0x5d   :  { %1212 = vmatprep.subr.bf16.mxu0 %v169_v9  ;;  %vm458_vm0 = vcmp.eq.s32.totalorder %v1875_v57, %v456_v58  ;;  %vm466_vm1 = vcmp.eq.s32.totalorder %v1875_v57, %v464_v59  ;;  %v633_v56 = vld [vmem:[#allocation10 + $0x58] sm:$0xff]  ;;  %v632_v58 = vld [vmem:[#allocation10 + $0x50] sm:$0xff]  ;;  %v647_v59 = vld [vmem:[#allocation10 + $0xc8] sm:$0xff] }
  0x60   :  { %1213 = vmatpush3.bf16.msra.mxu0 %v169_v9 }
  0x61   :  { %1214 = vmatprep.subr.bf16.mxu0 %v168_v12 }
  0x64   :  { %1215 = vmatpush3.bf16.msra.mxu0 %v168_v12 }
  0x65   :  { %1216 = vmatprep.subr.bf16.mxu0 %v167_v15 }
  0x68   :  { %1217 = vmatpush3.bf16.msra.mxu0 %v167_v15 }
  0x69   :  { %1218 = vmatprep.subr.bf16.mxu0 %v166_v18 }
  0x6c   :  { %1219 = vmatpush3.bf16.msra.mxu0 %v166_v18 }
  0x6d   :  { %1220 = vmatprep.subr.bf16.mxu0 %v165_v21 }
  0x70   :  { %1221 = vmatpush3.bf16.msra.mxu0 %v165_v21 }
  0x71   :  { %1222 = vmatprep.subr.bf16.mxu0 %v164_v24 }
  0x74   :  { %1223 = vmatpush3.bf16.msra.mxu0 %v164_v24 }
  0x77   :  { %1225 = vmatmul.mubr.bf16.vlgmr.msra.gmra.mxu0 %v1496_v25 }
  0x78   :  { %1228 = vmatprep.mubr.bf16.mxu0 %v1497_v26 }
  0x7f   :  { %1229 = vmatmul.mubr.bf16.gmra.mxu0 %v1498_v27 }
  0x80   :  { %1232 = vmatprep.mubr.bf16.mxu0 %v1499_v28 }
  0x87   :  { %1233 = vmatmul.mubr.bf16.gmra.mxu0 %v1500_v29 }
  0x88   :  { %1236 = vmatprep.mubr.bf16.mxu0 %v1501_v30 }
  0x8f   :  { %1237 = vmatmul.mubr.bf16.gmra.mxu0 %v1502_v31 }
  0x90   :  { %1304 = vmatprep.mubr.msk.f32.mxu0 %vm458_vm0, %v1692_v60 }
 0x137   :  { %v1836_v32 = vpop.f32.mrf.mxu0 }
 0x139   :  { %v1838_v33 = vpop.f32.mrf.mxu0 }
 0x13b   :  { %v1840_v34 = vpop.f32.mrf.mxu0 }
 0x13c   :  { %v334_v54 = vpack.c.bf16 %v1840_v34, %v1836_v32 }
 0x13d   :  { %v1842_v35 = vpop.f32.mrf.mxu0 }
 0x13e   :  { %v333_v55 = vpack.c.bf16 %v1842_v35, %v1838_v33 }
 0x13f   :  { %v1844_v36 = vpop.f32.mrf.mxu0 }
 0x141   :  { %v1846_v37 = vpop.f32.mrf.mxu0 }
 0x143   :  { %v1848_v38 = vpop.f32.mrf.mxu0 }
 0x144   :  { %v336_v52 = vpack.c.bf16 %v1848_v38, %v1844_v36 }
 0x145   :  { %v1850_v39 = vpop.f32.mrf.mxu0 }
 0x146   :  { %v335_v53 = vpack.c.bf16 %v1850_v39, %v1846_v37 }
 0x147   :  { %v1852_v40 = vpop.f32.mrf.mxu0 }
 0x149   :  { %v1854_v41 = vpop.f32.mrf.mxu0 }
 0x14b   :  { %v1856_v42 = vpop.f32.mrf.mxu0 }
 0x14c   :  { %v338_v50 = vpack.c.bf16 %v1856_v42, %v1852_v40 }
 0x14d   :  { %v1858_v43 = vpop.f32.mrf.mxu0 }
 0x14e   :  { %v337_v51 = vpack.c.bf16 %v1858_v43, %v1854_v41 }
 0x14f   :  { %v1238_v44 = vpop.f32.mrf.mxu0 }
 0x151   :  { %v1860_v45 = vpop.f32.mrf.mxu0 }
 0x153   :  { %v1239_v46 = vpop.f32.mrf.mxu0 }
 0x154   :  { %v340_v47 = vpack.c.bf16 %v1239_v46, %v1238_v44 }
 0x155   :  { %v305_v48 = vpop.f32.mrf.mxu0 }
 0x156   :  { %v339_v49 = vpack.c.bf16 %v305_v48, %v1860_v45  ;;  %1240 = vmatprep.subr.bf16.mxu1 %v340_v47 }
 0x157   :  { %1241 = vmatpush3.bf16.msra.mxu1 %v340_v47  ;;  %v330_v47 = vadd.f32 %v305_v48, %v1796_v4  ;;  %v327_v4 = vadd.f32 %v1852_v40, %v1800_v6  ;;  %v324_v6 = vadd.f32 %v1848_v38, %v1814_v14  ;;  %v321_v14 = vadd.f32 %v1846_v37, %v1818_v16  ;;  %v651_v48 = vld [vmem:[#allocation10 + $0xe8] sm:$0xff] }
 0x158   :  { %1242 = vmatprep.subr.bf16.mxu1 %v339_v49  ;;  %v318_v37 = vadd.f32 %v1842_v35, %v1832_v23  ;;  %v637_v23 = vld [vmem:[#allocation10 + $0x78] sm:$0xff]  ;;  %v636_v35 = vld [vmem:[#allocation10 + $0x70] sm:$0xff] }
 0x15b   :  { %1243 = vmatpush3.bf16.msra.mxu1 %v339_v49 }
 0x15c   :  { %1244 = vmatprep.subr.bf16.mxu1 %v338_v50 }
 0x15f   :  { %1245 = vmatpush3.bf16.msra.mxu1 %v338_v50  ;;  %v329_v50 = vadd.f32 %v1860_v45, %v1792_v2  ;;  %v326_v2 = vadd.f32 %v1858_v43, %v1808_v10  ;;  %v323_v10 = vadd.f32 %v1844_v36, %v1812_v13  ;;  %v320_v13 = vadd.f32 %v1840_v34, %v1826_v20 }
 0x160   :  { %1246 = vmatprep.subr.bf16.mxu1 %v337_v51  ;;  %v319_v36 = vadd.f32 %v1836_v32, %v1824_v19  ;;  %v317_v34 = vadd.f32 %v1838_v33, %v1830_v22  ;;  %v457_v32 = vld [vmem:[#allocation2 + $0x8] sm:$0xff]  ;;  %v653_v22 = vld [vmem:[#allocation10 + $0xf8] sm:$0xff]  ;;  %v652_v33 = vld [vmem:[#allocation10 + $0xf0] sm:$0xff] }
 0x161   :  { %vm459_vm2 = vcmp.eq.s32.totalorder %v1875_v57, %v457_v32  ;;  %v921_v32 = vld [vmem:[#allocation13 + $0x30] sm:$0xff] }
 0x163   :  { %1247 = vmatpush3.bf16.msra.mxu1 %v337_v51 }
 0x164   :  { %1248 = vmatprep.subr.bf16.mxu1 %v336_v52 }
 0x167   :  { %1249 = vmatpush3.bf16.msra.mxu1 %v336_v52  ;;  %v635_v52 = vld [vmem:[#allocation10 + $0x68] sm:$0xff] }
 0x168   :  { %1250 = vmatprep.subr.bf16.mxu1 %v335_v53 }
 0x16b   :  { %1251 = vmatpush3.bf16.msra.mxu1 %v335_v53  ;;  %v650_v53 = vld [vmem:[#allocation10 + $0xe0] sm:$0xff] }
 0x16c   :  { %1252 = vmatprep.subr.bf16.mxu1 %v334_v54 }
 0x16f   :  { %1253 = vmatpush3.bf16.msra.mxu1 %v334_v54  ;;  %v634_v54 = vld [vmem:[#allocation10 + $0x60] sm:$0xff] }
 0x170   :  { %1254 = vmatprep.subr.bf16.mxu1 %v333_v55 }
 0x173   :  { %1255 = vmatpush3.bf16.msra.mxu1 %v333_v55  ;;  %v649_v55 = vld [vmem:[#allocation10 + $0xd8] sm:$0xff] }
 0x176   :  { %1257 = vmatmul.mubr.bf16.vlgmr.msra.gmra.mxu1 %v1496_v25 }
 0x177   :  { %1260 = vmatprep.mubr.bf16.mxu1 %v1497_v26 }
 0x17e   :  { %1261 = vmatmul.mubr.bf16.gmra.mxu1 %v1498_v27  ;;  %v332_v27 = vadd.f32 %v1239_v46, %v1790_v1 }
 0x17f   :  { %1264 = vmatprep.mubr.bf16.mxu1 %v1499_v28 }
 0x186   :  { %1265 = vmatmul.mubr.bf16.gmra.mxu1 %v1500_v29  ;;  %v331_v29 = vadd.f32 %v1238_v44, %v1788_v0  ;;  %v328_v0 = vadd.f32 %v1856_v42, %v1802_v7  ;;  %v325_v7 = vadd.f32 %v1854_v41, %v1804_v8  ;;  %v322_v8 = vadd.f32 %v1850_v39, %v1820_v17  ;;  %v465_v39 = vld [vmem:[#allocation5 + $0x8] sm:$0xff] }
 0x187   :  { %1268 = vmatprep.mubr.bf16.mxu1 %v1501_v30  ;;  %vm467_vm3 = vcmp.eq.s32.totalorder %v1875_v57, %v465_v39  ;;  %v648_v57 = vld [vmem:[#allocation10 + $0xd0] sm:$0xff]  ;;  %v920_v39 = vld [vmem:[#allocation13 + $0x28] sm:$0xff] }
 0x18e   :  { %1269 = vmatmul.mubr.bf16.gmra.mxu1 %v1502_v31 }
 0x18f   :  { %1339 = vmatprep.mubr.msk.f32.mxu1 %vm466_vm1, %v1692_v60 }
 0x236   :  { %v1881_v61 = vpop.f32.mrf.mxu1 }
 0x237   :  { %v440_v20 = vadd.f32 %v1881_v61, %v319_v36  ;;  %v646_v61 = vld [vmem:[#allocation10 + $0xc0] sm:$0xff] }
 0x238   :  { %v1883_v62 = vpop.f32.mrf.mxu1  ;;  %v927_v36 = vld [vmem:[#allocation13 + $0x60] sm:$0xff] }
 0x239   :  { %v438_v46 = vadd.f32 %v1883_v62, %v317_v34  ;;  %v630_v62 = vld [vmem:[#allocation10 + $0x40] sm:$0xff] }
 0x23a   :  { %v1885_v63 = vpop.f32.mrf.mxu1  ;;  %v923_v34 = vld [vmem:[#allocation13 + $0x40] sm:$0xff] }
 0x23b   :  { %v441_v16 = vadd.f32 %v1885_v63, %v320_v13  ;;  %v645_v63 = vld [vmem:[#allocation10 + $0xb8] sm:$0xff]  ;;  %v929_v13 = vld [vmem:[#allocation13 + $0x70] sm:$0xff] }
 0x23c   :  { %v1887_v3 = vpop.f32.mrf.mxu1 }
 0x23d   :  { %v439_v19 = vadd.f32 %v1887_v3, %v318_v37  ;;  %v629_v3 = vld [vmem:[#allocation10 + $0x38] sm:$0xff]  ;;  %v925_v37 = vld [vmem:[#allocation13 + $0x50] sm:$0xff] }
 0x23e   :  { %v1889_v5 = vpop.f32.mrf.mxu1 }
 0x23f   :  { %v444_v41 = vadd.f32 %v1889_v5, %v323_v10  ;;  %v644_v5 = vld [vmem:[#allocation10 + $0xb0] sm:$0xff]  ;;  %v819_v10 = vld [vmem:[#allocation11 + $0x20] sm:$0xff] }
 0x240   :  { %v1891_v9 = vpop.f32.mrf.mxu1 }
 0x241   :  { %v442_v17 = vadd.f32 %v1891_v9, %v321_v14  ;;  %v628_v9 = vld [vmem:[#allocation10 + $0x30] sm:$0xff]  ;;  %v815_v14 = vld [vmem:[#allocation11] sm:$0xff] }
 0x242   :  { %v1263_v11 = vpop.f32.mrf.mxu1 }
 0x243   :  { %v445_v43 = vadd.f32 %v1263_v11, %v324_v6  ;;  %v643_v11 = vld [vmem:[#allocation10 + $0xa8] sm:$0xff]  ;;  %v821_v6 = vld [vmem:[#allocation11 + $0x30] sm:$0xff] }
 0x244   :  { %v1893_v12 = vpop.f32.mrf.mxu1 }
 0x245   :  { %v443_v38 = vadd.f32 %v1893_v12, %v322_v8  ;;  %v627_v12 = vld [vmem:[#allocation10 + $0x28] sm:$0xff]  ;;  %v817_v8 = vld [vmem:[#allocation11 + $0x10] sm:$0xff] }
 0x246   :  { %v1266_v15 = vpop.f32.mrf.mxu1 }
 0x247   :  { %v448_v45 = vadd.f32 %v1266_v15, %v327_v4  ;;  %v642_v15 = vld [vmem:[#allocation10 + $0xa0] sm:$0xff] }
 0x248   :  { %v407_v18 = vpop.f32.mrf.mxu1  ;;  %v827_v4 = vld [vmem:[#allocation11 + $0x60] sm:$0xff] }
 0x249   :  { %v446_v40 = vadd.f32 %v407_v18, %v325_v7  ;;  %v626_v18 = vld [vmem:[#allocation10 + $0x20] sm:$0xff] }
 0x24a   :  { %v1267_v21 = vpop.f32.mrf.mxu1  ;;  %v823_v7 = vld [vmem:[#allocation11 + $0x40] sm:$0xff] }
 0x24b   :  { %v449_v44 = vadd.f32 %v1267_v21, %v328_v0  ;;  %v641_v21 = vld [vmem:[#allocation10 + $0x98] sm:$0xff]  ;;  %v829_v0 = vld [vmem:[#allocation11 + $0x70] sm:$0xff] }
 0x24c   :  { %v410_v24 = vpop.f32.mrf.mxu1 }
 0x24d   :  { %v447_v42 = vadd.f32 %v410_v24, %v326_v2  ;;  %v625_v24 = vld [vmem:[#allocation10 + $0x18] sm:$0xff]  ;;  %v825_v2 = vld [vmem:[#allocation11 + $0x50] sm:$0xff] }
 0x24e   :  { %v1270_v25 = vpop.f32.mrf.mxu1 }
 0x24f   :  { %v452_v49 = vadd.f32 %v1270_v25, %v331_v29  ;;  %v640_v25 = vld [vmem:[#allocation10 + $0x90] sm:$0xff]  ;;  %v638_v29 = vld [vmem:[#allocation10 + $0x80] sm:$0xff] }
 0x250   :  { %v423_v26 = vpop.f32.mrf.mxu1 }
 0x251   :  { %v450_v1 = vadd.f32 %v423_v26, %v329_v50  ;;  %v624_v26 = vld [vmem:[#allocation10 + $0x10] sm:$0xff] }
 0x252   :  { %v1271_v28 = vpop.f32.mrf.mxu1 }
 0x253   :  { %v453_v30 = vadd.f32 %v1271_v28, %v332_v27  ;;  %v639_v27 = vld [vmem:[#allocation10 + $0x88] sm:$0xff] }
 0x254   :  { %v426_v31 = vpop.f32.mrf.mxu1  ;;  %v623_v28 = vld [vmem:[#allocation10 + $0x8] sm:$0xff] }
 0x255   :  { %1272 = vmatprep.subr.mxu0 %v453_v30  ;;  %1307 = vmatprep.subr.mxu1 %v453_v30  ;;  %v451_v51 = vadd.f32 %v426_v31, %v330_v47  ;;  %v830_v31 = vld [vmem:[#allocation11 + $0x78] sm:$0xff] }
 0x256   :  { %1273 = vmatpush3.msra.mxu0 %v453_v30  ;;  %1308 = vmatpush3.msra.mxu1 %v453_v30  ;;  %v622_v30 = vld [vmem:[#allocation10] sm:$0xff] }
 0x257   :  { %1274 = vmatprep.subr.mxu0 %v452_v49  ;;  %1309 = vmatprep.subr.mxu1 %v452_v49 }
 0x258   :  { %1275 = vmatpush3.msra.mxu0 %v452_v49  ;;  %1310 = vmatpush3.msra.mxu1 %v452_v49 }
 0x259   :  { %1276 = vmatprep.subr.mxu0 %v451_v51  ;;  %1311 = vmatprep.subr.mxu1 %v451_v51 }
 0x25a   :  { %1277 = vmatpush3.msra.mxu0 %v451_v51  ;;  %1312 = vmatpush3.msra.mxu1 %v451_v51 }
 0x25b   :  { %1278 = vmatprep.subr.mxu0 %v450_v1  ;;  %1313 = vmatprep.subr.mxu1 %v450_v1 }
 0x25c   :  { %1279 = vmatpush3.msra.mxu0 %v450_v1  ;;  %1314 = vmatpush3.msra.mxu1 %v450_v1  ;;  %v828_v1 = vld [vmem:[#allocation11 + $0x68] sm:$0xff] }
 0x25d   :  { %1280 = vmatprep.subr.mxu0 %v449_v44  ;;  %1315 = vmatprep.subr.mxu1 %v449_v44 }
 0x25e   :  { %1281 = vmatpush3.msra.mxu0 %v449_v44  ;;  %1316 = vmatpush3.msra.mxu1 %v449_v44  ;;  %v826_v44 = vld [vmem:[#allocation11 + $0x58] sm:$0xff] }
 0x25f   :  { %1282 = vmatprep.subr.mxu0 %v448_v45  ;;  %1317 = vmatprep.subr.mxu1 %v448_v45 }
 0x260   :  { %1283 = vmatpush3.msra.mxu0 %v448_v45  ;;  %1318 = vmatpush3.msra.mxu1 %v448_v45  ;;  %v824_v45 = vld [vmem:[#allocation11 + $0x48] sm:$0xff] }
 0x261   :  { %1284 = vmatprep.subr.mxu0 %v447_v42  ;;  %1319 = vmatprep.subr.mxu1 %v447_v42 }
 0x262   :  { %1285 = vmatpush3.msra.mxu0 %v447_v42  ;;  %1320 = vmatpush3.msra.mxu1 %v447_v42  ;;  %v822_v42 = vld [vmem:[#allocation11 + $0x38] sm:$0xff] }
 0x263   :  { %1286 = vmatprep.subr.mxu0 %v446_v40  ;;  %1321 = vmatprep.subr.mxu1 %v446_v40 }
 0x264   :  { %1287 = vmatpush3.msra.mxu0 %v446_v40  ;;  %1322 = vmatpush3.msra.mxu1 %v446_v40  ;;  %v820_v40 = vld [vmem:[#allocation11 + $0x28] sm:$0xff] }
 0x265   :  { %1288 = vmatprep.subr.mxu0 %v445_v43  ;;  %1323 = vmatprep.subr.mxu1 %v445_v43 }
 0x266   :  { %1289 = vmatpush3.msra.mxu0 %v445_v43  ;;  %1324 = vmatpush3.msra.mxu1 %v445_v43  ;;  %v818_v43 = vld [vmem:[#allocation11 + $0x18] sm:$0xff] }
 0x267   :  { %1290 = vmatprep.subr.mxu0 %v444_v41  ;;  %1325 = vmatprep.subr.mxu1 %v444_v41 }
 0x268   :  { %1291 = vmatpush3.msra.mxu0 %v444_v41  ;;  %1326 = vmatpush3.msra.mxu1 %v444_v41  ;;  %v816_v41 = vld [vmem:[#allocation11 + $0x8] sm:$0xff] }
 0x269   :  { %1292 = vmatprep.subr.mxu0 %v443_v38  ;;  %1327 = vmatprep.subr.mxu1 %v443_v38 }
 0x26a   :  { %1293 = vmatpush3.msra.mxu0 %v443_v38  ;;  %1328 = vmatpush3.msra.mxu1 %v443_v38  ;;  %v930_v38 = vld [vmem:[#allocation13 + $0x78] sm:$0xff] }
 0x26b   :  { %1294 = vmatprep.subr.mxu0 %v442_v17  ;;  %1329 = vmatprep.subr.mxu1 %v442_v17 }
 0x26c   :  { %1295 = vmatpush3.msra.mxu0 %v442_v17  ;;  %1330 = vmatpush3.msra.mxu1 %v442_v17  ;;  %v928_v17 = vld [vmem:[#allocation13 + $0x68] sm:$0xff] }
 0x26d   :  { %1296 = vmatprep.subr.mxu0 %v441_v16  ;;  %1331 = vmatprep.subr.mxu1 %v441_v16 }
 0x26e   :  { %1297 = vmatpush3.msra.mxu0 %v441_v16  ;;  %1332 = vmatpush3.msra.mxu1 %v441_v16  ;;  %v926_v16 = vld [vmem:[#allocation13 + $0x58] sm:$0xff] }
 0x26f   :  { %1298 = vmatprep.subr.mxu0 %v440_v20  ;;  %1333 = vmatprep.subr.mxu1 %v440_v20 }
 0x270   :  { %1299 = vmatpush3.msra.mxu0 %v440_v20  ;;  %1334 = vmatpush3.msra.mxu1 %v440_v20  ;;  %v924_v20 = vld [vmem:[#allocation13 + $0x48] sm:$0xff] }
 0x271   :  { %1300 = vmatprep.subr.mxu0 %v439_v19  ;;  %1335 = vmatprep.subr.mxu1 %v439_v19 }
 0x272   :  { %1301 = vmatpush3.msra.mxu0 %v439_v19  ;;  %1336 = vmatpush3.msra.mxu1 %v439_v19  ;;  %v922_v19 = vld [vmem:[#allocation13 + $0x38] sm:$0xff] }
 0x273   :  { %1302 = vmatprep.subr.mxu0 %v438_v46  ;;  %1337 = vmatprep.subr.mxu1 %v438_v46 }
 0x274   :  { %1303 = vmatpush3.msra.mxu0 %v438_v46  ;;  %1338 = vmatpush3.msra.mxu1 %v438_v46  ;;  %v919_v46 = vld [vmem:[#allocation13 + $0x20] sm:$0xff] }
 0x275   :  { %1305 = vmatmul.mubr.msk.f32.vlgmr.msra.gmra.mxu0 %vm459_vm2, %v1692_v60  ;;  %1340 = vmatmul.mubr.msk.f32.vlgmr.msra.gmra.mxu1 %vm467_vm3, %v1692_v60  ;;  %v631_v60 = vld [vmem:[#allocation10 + $0x48] sm:$0xff] }
 0x276   :  { %1342 = vmatprep.subr.mxu0 %v653_v22  ;;  %1377 = vmatprep.subr.mxu1 %v637_v23 }
 0x277   :  { %1343 = vmatpush3.msra.mxu0 %v653_v22  ;;  %1378 = vmatpush3.msra.mxu1 %v637_v23 }
 0x278   :  { %1344 = vmatprep.subr.mxu0 %v652_v33  ;;  %1379 = vmatprep.subr.mxu1 %v636_v35 }
 0x279   :  { %1345 = vmatpush3.msra.mxu0 %v652_v33  ;;  %1380 = vmatpush3.msra.mxu1 %v636_v35  ;;  %v1063_v35 = vld [vmem:[%s1955_s5] ss:$0 sm:$0xff] }
 0x27a   :  { %1346 = vmatprep.subr.mxu0 %v651_v48  ;;  %1381 = vmatprep.subr.mxu1 %v635_v52 }
 0x27b   :  { %1347 = vmatpush3.msra.mxu0 %v651_v48  ;;  %1382 = vmatpush3.msra.mxu1 %v635_v52 }
 0x27c   :  { %1348 = vmatprep.subr.mxu0 %v650_v53  ;;  %1383 = vmatprep.subr.mxu1 %v634_v54 }
 0x27d   :  { %1349 = vmatpush3.msra.mxu0 %v650_v53  ;;  %1384 = vmatpush3.msra.mxu1 %v634_v54 }
 0x27e   :  { %1350 = vmatprep.subr.mxu0 %v649_v55  ;;  %1385 = vmatprep.subr.mxu1 %v633_v56 }
 0x27f   :  { %1351 = vmatpush3.msra.mxu0 %v649_v55  ;;  %1386 = vmatpush3.msra.mxu1 %v633_v56 }
 0x280   :  { %1352 = vmatprep.subr.mxu0 %v648_v57  ;;  %1387 = vmatprep.subr.mxu1 %v632_v58 }
 0x281   :  { %1353 = vmatpush3.msra.mxu0 %v648_v57  ;;  %1388 = vmatpush3.msra.mxu1 %v632_v58  ;;  %v918_v58 = vld [vmem:[#allocation13 + $0x18] sm:$0xff] }
 0x282   :  { %1354 = vmatprep.subr.mxu0 %v647_v59  ;;  %1389 = vmatprep.subr.mxu1 %v631_v60 }
 0x283   :  { %1355 = vmatpush3.msra.mxu0 %v647_v59  ;;  %1390 = vmatpush3.msra.mxu1 %v631_v60  ;;  %v917_v59 = vld [vmem:[#allocation13 + $0x10] sm:$0xff]  ;;  %v916_v60 = vld [vmem:[#allocation13 + $0x8] sm:$0xff] }
 0x284   :  { %1356 = vmatprep.subr.mxu0 %v646_v61  ;;  %1391 = vmatprep.subr.mxu1 %v630_v62 }
 0x285   :  { %1357 = vmatpush3.msra.mxu0 %v646_v61  ;;  %1392 = vmatpush3.msra.mxu1 %v630_v62  ;;  %v915_v61 = vld [vmem:[#allocation13] sm:$0xff] }
 0x286   :  { %1358 = vmatprep.subr.mxu0 %v645_v63  ;;  %1393 = vmatprep.subr.mxu1 %v629_v3  ;;  %v1064_v62 = vld [vmem:[%s1957_s7] ss:$0 sm:$0xff]  ;;  %s1693_s7 = smov [#allocation14]  }
 0x287   :  { %1359 = vmatpush3.msra.mxu0 %v645_v63  ;;  %1394 = vmatpush3.msra.mxu1 %v629_v3  ;;  %s1032_s3 = sshll.u32 %s1693_s7, 4  ;;  %s1033_s3 = int_to_ptr.vmem [resolvable:$true] %s1032_s3 }
 0x288   :  { %1360 = vmatprep.subr.mxu0 %v644_v5  ;;  %1395 = vmatprep.subr.mxu1 %v628_v9  ;;  %p1656_p8 = scmp.lt.s32.totalorder %s1033_s3, %s1033_s3 }
 0x289   :  { %1361 = vmatpush3.msra.mxu0 %v644_v5  ;;  %1396 = vmatpush3.msra.mxu1 %v628_v9 }
 0x28a   :  { %1362 = vmatprep.subr.mxu0 %v643_v11  ;;  %1397 = vmatprep.subr.mxu1 %v627_v12 }
 0x28b   :  { %1363 = vmatpush3.msra.mxu0 %v643_v11  ;;  %1398 = vmatpush3.msra.mxu1 %v627_v12 }
 0x28c   :  { %1364 = vmatprep.subr.mxu0 %v642_v15  ;;  %1399 = vmatprep.subr.mxu1 %v626_v18 }
 0x28d   :  { %1365 = vmatpush3.msra.mxu0 %v642_v15  ;;  %1400 = vmatpush3.msra.mxu1 %v626_v18  ;;  %v1065_v15 = vld [vmem:[%s1959_s9] ss:$0 sm:$0xff]  ;;  %s1651_s9 = scalar_lea.vmem %s1033_s3, 256 }
 0x28e   :  { %1366 = vmatprep.subr.mxu0 %v641_v21  ;;  %1401 = vmatprep.subr.mxu1 %v625_v24  ;;  %p1652_p7 = scmp.ne.s32.totalorder %s1033_s3, %s1651_s9  ;;  %p1657_p9 = scmp.lt.s32.totalorder %s1651_s9, %s1651_s9 }
 0x28f   :  { %1367 = vmatpush3.msra.mxu0 %v641_v21  ;;  %1402 = vmatpush3.msra.mxu1 %v625_v24 }
 0x290   :  { %1368 = vmatprep.subr.mxu0 %v640_v25  ;;  %1403 = vmatprep.subr.mxu1 %v624_v26  ;;  %p1658_p10 = por %p1657_p9, %p1656_p8 }
 0x291   :  { %1369 = vmatpush3.msra.mxu0 %v640_v25  ;;  %1404 = vmatpush3.msra.mxu1 %v624_v26 }
 0x292   :  { %1370 = vmatprep.subr.mxu0 %v639_v27  ;;  %1405 = vmatprep.subr.mxu1 %v623_v28  ;;  %p1659_p11 = pnand %p1658_p10, %p1652_p7 }
 0x293   :  { %1371 = vmatpush3.msra.mxu0 %v639_v27  ;;  %1406 = vmatpush3.msra.mxu1 %v623_v28 }
 0x294   :  { %1372 = vmatprep.subr.mxu0 %v638_v29  ;;  %1407 = vmatprep.subr.mxu1 %v622_v30 }
 0x295   :  { %1373 = vmatpush3.msra.mxu0 %v638_v29  ;;  %1408 = vmatpush3.msra.mxu1 %v622_v30 }
 0x296   :  { %1412 = vmatprep.subr.mxu0 %v830_v31  ;;  %1447 = vmatprep.subr.mxu1 %v930_v38 }
 0x335   :  { %v1306_v47 = vpop.f32.mrf.mxu0  ;;  %v1341_v49 = vpop.f32.mrf.mxu1 }
 0x337   :  { %v538_v50 = vpop.f32.mrf.mxu0  ;;  %v613_v51 = vpop.f32.mrf.mxu1 }
 0x338   :  { %1374 = vmatprep.mubr.f32.mxu0 %v613_v51  ;;  %1409 = vmatprep.mubr.f32.mxu1 %v538_v50 }
 0x339   :  { %1375 = vmatmul.mubr.f32.vlgmr.msra.gmra.mxu0 %v1341_v49  ;;  %1410 = vmatmul.mubr.f32.vlgmr.msra.gmra.mxu1 %v1306_v47 }
 0x33a   :  { %1413 = vmatpush3.msra.mxu0 %v830_v31  ;;  %1448 = vmatpush3.msra.mxu1 %v930_v38 }
 0x33b   :  { %1414 = vmatprep.subr.mxu0 %v829_v0  ;;  %1449 = vmatprep.subr.mxu1 %v929_v13 }
 0x33c   :  { %1415 = vmatpush3.msra.mxu0 %v829_v0  ;;  %1450 = vmatpush3.msra.mxu1 %v929_v13 }
 0x33d   :  { %1416 = vmatprep.subr.mxu0 %v828_v1  ;;  %1451 = vmatprep.subr.mxu1 %v928_v17 }
 0x33e   :  { %1417 = vmatpush3.msra.mxu0 %v828_v1  ;;  %1452 = vmatpush3.msra.mxu1 %v928_v17 }
 0x33f   :  { %1418 = vmatprep.subr.mxu0 %v827_v4  ;;  %1453 = vmatprep.subr.mxu1 %v927_v36 }
 0x340   :  { %1419 = vmatpush3.msra.mxu0 %v827_v4  ;;  %1454 = vmatpush3.msra.mxu1 %v927_v36 }
 0x341   :  { %1420 = vmatprep.subr.mxu0 %v826_v44  ;;  %1455 = vmatprep.subr.mxu1 %v926_v16 }
 0x342   :  { %1421 = vmatpush3.msra.mxu0 %v826_v44  ;;  %1456 = vmatpush3.msra.mxu1 %v926_v16 }
 0x343   :  { %1422 = vmatprep.subr.mxu0 %v825_v2  ;;  %1457 = vmatprep.subr.mxu1 %v925_v37 }
 0x344   :  { %1423 = vmatpush3.msra.mxu0 %v825_v2  ;;  %1458 = vmatpush3.msra.mxu1 %v925_v37 }
 0x345   :  { %1424 = vmatprep.subr.mxu0 %v824_v45  ;;  %1459 = vmatprep.subr.mxu1 %v924_v20 }
 0x346   :  { %1425 = vmatpush3.msra.mxu0 %v824_v45  ;;  %1460 = vmatpush3.msra.mxu1 %v924_v20 }
 0x347   :  { %1426 = vmatprep.subr.mxu0 %v823_v7  ;;  %1461 = vmatprep.subr.mxu1 %v923_v34 }
 0x348   :  { %1427 = vmatpush3.msra.mxu0 %v823_v7  ;;  %1462 = vmatpush3.msra.mxu1 %v923_v34 }
 0x349   :  { %1428 = vmatprep.subr.mxu0 %v822_v42  ;;  %1463 = vmatprep.subr.mxu1 %v922_v19 }
 0x34a   :  { %1429 = vmatpush3.msra.mxu0 %v822_v42  ;;  %1464 = vmatpush3.msra.mxu1 %v922_v19 }
 0x34b   :  { %1430 = vmatprep.subr.mxu0 %v821_v6  ;;  %1465 = vmatprep.subr.mxu1 %v921_v32 }
 0x34c   :  { %1431 = vmatpush3.msra.mxu0 %v821_v6  ;;  %1466 = vmatpush3.msra.mxu1 %v921_v32 }
 0x34d   :  { %1432 = vmatprep.subr.mxu0 %v820_v40  ;;  %1467 = vmatprep.subr.mxu1 %v920_v39 }
 0x34e   :  { %1433 = vmatpush3.msra.mxu0 %v820_v40  ;;  %1468 = vmatpush3.msra.mxu1 %v920_v39 }
 0x34f   :  { %1434 = vmatprep.subr.mxu0 %v819_v10  ;;  %1469 = vmatprep.subr.mxu1 %v919_v46 }
 0x350   :  { %1435 = vmatpush3.msra.mxu0 %v819_v10  ;;  %1470 = vmatpush3.msra.mxu1 %v919_v46 }
 0x351   :  { %1436 = vmatprep.subr.mxu0 %v818_v43  ;;  %1471 = vmatprep.subr.mxu1 %v918_v58 }
 0x352   :  { %1437 = vmatpush3.msra.mxu0 %v818_v43  ;;  %1472 = vmatpush3.msra.mxu1 %v918_v58 }
 0x353   :  { %1438 = vmatprep.subr.mxu0 %v817_v8  ;;  %1473 = vmatprep.subr.mxu1 %v917_v59 }
 0x354   :  { %1439 = vmatpush3.msra.mxu0 %v817_v8  ;;  %1474 = vmatpush3.msra.mxu1 %v917_v59 }
 0x355   :  { %1440 = vmatprep.subr.mxu0 %v816_v41  ;;  %1475 = vmatprep.subr.mxu1 %v916_v60 }
 0x356   :  { %1441 = vmatpush3.msra.mxu0 %v816_v41  ;;  %1476 = vmatpush3.msra.mxu1 %v916_v60 }
 0x357   :  { %1442 = vmatprep.subr.mxu0 %v815_v14  ;;  %1477 = vmatprep.subr.mxu1 %v915_v61 }
 0x358   :  { %1443 = vmatpush3.msra.mxu0 %v815_v14  ;;  %1478 = vmatpush3.msra.mxu1 %v915_v61 }
 0x3f9   :  { %v1376_v22 = vpop.f32.mrf.mxu0  ;;  %v1411_v23 = vpop.f32.mrf.mxu1 }
 0x3fa   :  { %v801_v33 = vadd.f32 %v1411_v23, %v1376_v22 }
 0x3fb   :  { %v720_v48 = vpop.f32.mrf.mxu0  ;;  %v795_v52 = vpop.f32.mrf.mxu1 }
 0x3fc   :  { %v796_v53 = vadd.f32 %v795_v52, %v720_v48  ;;  %v812_v54 = vadd.f32 %v1063_v35, %v801_v33 }
 0x3fe   :  { %v811_v55 = vadd.f32 %v1063_v35, %v796_v53  ;;  %v814_v57 = vmax.f32 %v812_v54, 0.0 }
 0x400   :  { %v813_v56 = vmax.f32 %v811_v55, 0.0 }
 0x402   :  { %1444 = vmatprep.mubr.f32.mxu0 %v813_v56 }
 0x403   :  { %1445 = vmatmul.mubr.f32.vlgmr.msra.gmra.mxu0 %v814_v57 }
 0x4c3   :  { %v1446_v63 = vpop.f32.mrf.mxu0 }
 0x4c4   :  { %v910_v3 = vadd.f32 %v1446_v63, %v1064_v62 }
 0x4c5   :  { %v904_v5 = vpop.f32.mrf.mxu0 }
 0x4c6   :  { %v905_v9 = vadd.f32 %v1064_v62, %v904_v5  ;;  %v914_v12 = vmax.f32 %v910_v3, 0.0 }
 0x4c8   :  { %v913_v11 = vmax.f32 %v905_v9, 0.0 }
 0x4ca   :  { %1479 = vmatprep.mubr.f32.mxu1 %v913_v11 }
 0x4cb   :  { %1480 = vmatmul.mubr.f32.vlgmr.msra.gmra.mxu1 %v914_v12 }
 0x58b   :  { %v1481_v18 = vpop.f32.mrf.mxu1 }
 0x58c   :  { %v1010_v21 = vadd.f32 %v1481_v18, %v1065_v15 }
 0x58d   :  { %v1004_v24 = vpop.f32.mrf.mxu1 }
 0x58e   :  { %v1067_v25 = vmul.f32 -1.442695, %v1010_v21  ;;  %v1005_v26 = vadd.f32 %v1065_v15, %v1004_v24 }
 0x590   :  { %1503 = vpow2.f32 %v1067_v25  ;;  %v1066_v27 = vmul.f32 -1.442695, %v1005_v26 }
 0x592   :  { %1505 = vpow2.f32 %v1066_v27 }
 0x59d   :  { %v1504_v28 = vpop.eup %1503 }
 0x59e   :  { %v1020_v29 = vadd.f32 1.0, %v1504_v28 }
 0x59f   :  { %v1506_v30 = vpop.eup %1505 }
 0x5a0   :  { %1507 = vrcp.f32 %v1020_v29  ;;  %v1019_v31 = vadd.f32 1.0, %v1506_v30 }
 0x5a2   :  { %1509 = vrcp.f32 %v1019_v31 }
 0x5ad   :  { %v1508_v47 = vpop.eup %1507 }
 0x5ae   :  { %1026 = vst [vmem:[#allocation14 + $0x8] sm:$0xff] %v1508_v47 }
 0x5af   :  { %v1510_v49 = vpop.eup %1509 }
 0x5b0   :  { %1025 = vst [vmem:[#allocation14] sm:$0xff] %v1510_v49 }
 0x5b1   :  { %1662 = shalt.err (!%p1659_p11)
}
 0x5b2   :  { %1038 = dma.vmem_to_hbm [thread:$0]  %s1033_s3, 256, %s1960_s10, [#allocation4], %s1683_s18, %s1683_s18, %s1684_s19  }
 0x5b3   :  { %1679 = dma.done.wait [#allocation4], 256  }
 0x5b4   :  { %1680 = vsyncadd [#allocation4], 4294967040 }
 0x5b5   :  { %1042 = vsyncpa [#allocation3], 1 }
 0x5b6   :  { %1043 = vsyncpa [#allocation6], 1 }
 0x5b7   :  { %1044 = vsyncpa [#allocation9], 1 }
 0x5b8   :  { %1045 = vsyncpa [#allocation12], 1 }
 0x5b9   :  { %1046 = vsyncpa [#allocation4], 1 }

</bundles_post_ra>
